<compile_context>
chip_gen: v7x
topology: tpu7x:2x2x1
jax: 0.10.0
libtpu: 0.0.40
codegen_flags: <defaults>
</compile_context>

<pallas_src>
import functools

import jax
import jax.numpy as jnp
from jax.experimental import pallas as pl
from jax.experimental.pallas import tpu as pltpu


def _round_up(x: int, m: int) -> int:
    return (x + m - 1) // m * m


def _mlp_kernel(x_ref, w1t_ref, b1_ref, w2t_ref, b2_ref, o_ref):
    # ---- layer 1: x @ W1^T + b1, sigmoid (MXU matmul, f32 accumulation) ----
    h = jnp.dot(x_ref[...], w1t_ref[...], preferred_element_type=jnp.float32)
    h = h + b1_ref[...]                       # broadcast [1, H_pad] over rows
    h = 1.0 / (1.0 + jnp.exp(-h))             # EUP exp; f32 epilogue (v5e-safe)

    # ---- layer 2: h @ W2^T + b2, sigmoid ----
    y = jnp.dot(h.astype(w2t_ref.dtype), w2t_ref[...],
                preferred_element_type=jnp.float32)
    y = y + b2_ref[...]                       # broadcast [1, O_pad]
    o_ref[...] = (1.0 / (1.0 + jnp.exp(-y))).astype(o_ref.dtype)


def prepare_params(w1, b1, w2, b2, *, use_bf16=False):
    """One-time layout prep (outside the hot path).

    w1: [hidden, in], b1: [hidden], w2: [out, hidden], b2: [out]  (PyTorch layout)
    Returns transposed, zero-padded (lane-dense, 128-multiple) parameters.
    """
    H, IN = w1.shape
    O = w2.shape[0]
    IN_P, H_P, O_P = _round_up(IN, 128), _round_up(H, 128), _round_up(O, 128)

    w_dtype = jnp.bfloat16 if use_bf16 else w1.dtype
    w1t = jnp.zeros((IN_P, H_P), w_dtype).at[:IN, :H].set(w1.T.astype(w_dtype))
    w2t = jnp.zeros((H_P, O_P), w_dtype).at[:H, :O].set(w2.T.astype(w_dtype))
    # Biases stay f32 (added to the f32 accumulator).
    b1r = jnp.zeros((1, H_P), jnp.float32).at[:, :H].set(b1.astype(jnp.float32))
    b2r = jnp.zeros((1, O_P), jnp.float32).at[:, :O].set(b2.astype(jnp.float32))
    return w1t, b1r, w2t, b2r, (IN, H, O)


def mlp_forward(x, w1t, b1r, w2t, b2r, out_size, *, use_bf16=False):
    """x: [B, in].  Params are the pre-padded/transposed arrays from prepare_params."""
    B, IN = x.shape
    IN_P, H_P = w1t.shape
    O_P = w2t.shape[1]
    out_dtype = x.dtype

    # ---- choose a batch tile (biggest that fits a conservative VMEM budget) ----
    TB = 256 if B >= 256 else _round_up(max(B, 1), 8)
    VMEM_BUDGET = 40 * 1024 * 1024  # bytes, headroom below the 48 MiB limit (v7x-safe)

    def tile_bytes(tb):
        # double-buffered x and out tiles + resident weights/biases + hidden activation
        return 4 * (2 * tb * IN_P + 2 * tb * O_P + tb * H_P
                    + IN_P * H_P + H_P * O_P + H_P + O_P)

    while TB > 8 and tile_bytes(TB) > VMEM_BUDGET:
        TB = max(8, _round_up(TB // 2, 8))

    B_pad = _round_up(B, TB)

    # ---- pad x to (B_pad, IN_P); padded columns/rows are zero ----
    x_dtype = jnp.bfloat16 if use_bf16 else x.dtype
    if B_pad != B or IN_P != IN or x_dtype != x.dtype:
        x_p = jnp.zeros((B_pad, IN_P), x_dtype).at[:B, :IN].set(x.astype(x_dtype))
    else:
        x_p = x

    grid = (B_pad // TB,)

    out_p = pl.pallas_call(
        _mlp_kernel,
        out_shape=jax.ShapeDtypeStruct((B_pad, O_P), out_dtype),
        grid=grid,
        in_specs=[
            pl.BlockSpec((TB, IN_P), lambda i: (i, 0)),   # x tile, pipelined over batch
            pl.BlockSpec((IN_P, H_P), lambda i: (0, 0)),  # W1^T, VMEM-resident
            pl.BlockSpec((1, H_P), lambda i: (0, 0)),     # b1,  VMEM-resident
            pl.BlockSpec((H_P, O_P), lambda i: (0, 0)),   # W2^T, VMEM-resident
            pl.BlockSpec((1, O_P), lambda i: (0, 0)),     # b2,  VMEM-resident
        ],
        out_specs=pl.BlockSpec((TB, O_P), lambda i: (i, 0)),
        compiler_params=pltpu.CompilerParams(
            dimension_semantics=("parallel",),            # batch tiles independent (v7x 2 TCs)
            vmem_limit_bytes=48 * 1024 * 1024,
        ),
    )(x_p, w1t, b1r, w2t, b2r)

    # Slice away batch / lane padding.
    return out_p[:B, :out_size]


def _reference(x, w1, b1, w2, b2):
    h = jax.nn.sigmoid(x @ w1.T + b1)
    return jax.nn.sigmoid(h @ w2.T + b2)


if __name__ == "__main__":
    # Small shapes consistent with the module: in=16, hidden=32, out=8, batch=8.
    in_size, hidden_size, out_size = 16, 32, 8
    batch = 8

    key = jax.random.PRNGKey(0)
    kx, kw1, kb1, kw2, kb2 = jax.random.split(key, 5)

    x = jax.random.normal(kx, (batch, in_size), dtype=jnp.float32)

    # Deterministic init mimicking PyTorch Linear default: U(-1/sqrt(fan_in), +).
    lim1 = 1.0 / jnp.sqrt(in_size)
    lim2 = 1.0 / jnp.sqrt(hidden_size)
    w1 = jax.random.uniform(kw1, (hidden_size, in_size), jnp.float32, -lim1, lim1)
    b1 = jax.random.uniform(kb1, (hidden_size,), jnp.float32, -lim1, lim1)
    w2 = jax.random.uniform(kw2, (out_size, hidden_size), jnp.float32, -lim2, lim2)
    b2 = jax.random.uniform(kb2, (out_size,), jnp.float32, -lim2, lim2)

    # One-time parameter layout prep (padding + transpose), then the hot path.
    w1t, b1r, w2t, b2r, _ = prepare_params(w1, b1, w2, b2, use_bf16=False)
    out = mlp_forward(x, w1t, b1r, w2t, b2r, out_size, use_bf16=False)
    out = jax.block_until_ready(out)

    ref = _reference(x, w1, b1, w2, b2)
    assert out.shape == (batch, out_size)
    assert jnp.allclose(out, ref, atol=1e-5, rtol=1e-5), "mismatch vs reference"

    print("KERNEL_OK")
</pallas_src>

<mosaic_0001>
module attributes {stable_mosaic.version = 11 : i64} {
  func.func @_mlp_kernel(%arg0: i32, %arg1: memref<8x128xf32, #tpu.memory_space<vmem>>, %arg2: memref<128x128xf32, #tpu.memory_space<vmem>>, %arg3: memref<1x128xf32, #tpu.memory_space<vmem>>, %arg4: memref<128x128xf32, #tpu.memory_space<vmem>>, %arg5: memref<1x128xf32, #tpu.memory_space<vmem>>, %arg6: memref<8x128xf32, #tpu.memory_space<vmem>>) attributes {dimension_semantics = [#tpu.dimension_semantics<parallel>], iteration_bounds = array<i64: 1>, scalar_prefetch = 0 : i64, scratch_operands = 0 : i64, tpu.core_type = #tpu.core_type<tc>, window_params = [{transform_indices = @transform_0, window_bounds = array<i64: 8, 128>}, {pipeline_mode = #tpu.pipeline_mode<synchronous>, transform_indices = @transform_1, window_bounds = array<i64: 128, 128>}, {pipeline_mode = #tpu.pipeline_mode<synchronous>, transform_indices = @transform_2, window_bounds = array<i64: 1, 128>}, {pipeline_mode = #tpu.pipeline_mode<synchronous>, transform_indices = @transform_3, window_bounds = array<i64: 128, 128>}, {pipeline_mode = #tpu.pipeline_mode<synchronous>, transform_indices = @transform_4, window_bounds = array<i64: 1, 128>}, {transform_indices = @transform_5, window_bounds = array<i64: 8, 128>}]} {
    %c0 = arith.constant 0 : index
    %c0_0 = arith.constant 0 : index
    %0 = vector.load %arg1[%c0, %c0_0] : memref<8x128xf32, #tpu.memory_space<vmem>>, vector<8x128xf32>
    %c0_1 = arith.constant 0 : index
    %c0_2 = arith.constant 0 : index
    %1 = vector.load %arg2[%c0_1, %c0_2] : memref<128x128xf32, #tpu.memory_space<vmem>>, vector<128x128xf32>
    %cst = arith.constant dense<0.000000e+00> : vector<8x128xf32>
    %2 = tpu.matmul %0, %1, %cst {dimension_numbers = #tpu.dot_dimension_numbers<[1], [0], [0], [1], [0, 0, 1, 1], [], []>} : vector<8x128xf32>, vector<128x128xf32>, vector<8x128xf32> -> vector<8x128xf32>
    %c0_3 = arith.constant 0 : index
    %c0_4 = arith.constant 0 : index
    %3 = vector.load %arg3[%c0_3, %c0_4] : memref<1x128xf32, #tpu.memory_space<vmem>>, vector<1x128xf32>
    %4 = vector.broadcast %3 : vector<1x128xf32> to vector<8x128xf32>
    %5 = arith.addf %2, %4 : vector<8x128xf32>
    %cst_5 = arith.constant 0.000000e+00 : f32
    %6 = vector.broadcast %cst_5 : f32 to vector<8x128xf32>
    %7 = arith.subf %6, %5 : vector<8x128xf32>
    %8 = math.exp %7 : vector<8x128xf32>
    %cst_6 = arith.constant 1.000000e+00 : f32
    %9 = vector.broadcast %cst_6 : f32 to vector<8x128xf32>
    %10 = arith.addf %9, %8 : vector<8x128xf32>
    %cst_7 = arith.constant 1.000000e+00 : f32
    %11 = vector.broadcast %cst_7 : f32 to vector<8x128xf32>
    %12 = arith.divf %11, %10 : vector<8x128xf32>
    %c0_8 = arith.constant 0 : index
    %c0_9 = arith.constant 0 : index
    %13 = vector.load %arg4[%c0_8, %c0_9] : memref<128x128xf32, #tpu.memory_space<vmem>>, vector<128x128xf32>
    %cst_10 = arith.constant dense<0.000000e+00> : vector<8x128xf32>
    %14 = tpu.matmul %12, %13, %cst_10 {dimension_numbers = #tpu.dot_dimension_numbers<[1], [0], [0], [1], [0, 0, 1, 1], [], []>} : vector<8x128xf32>, vector<128x128xf32>, vector<8x128xf32> -> vector<8x128xf32>
    %c0_11 = arith.constant 0 : index
    %c0_12 = arith.constant 0 : index
    %15 = vector.load %arg5[%c0_11, %c0_12] : memref<1x128xf32, #tpu.memory_space<vmem>>, vector<1x128xf32>
    %16 = vector.broadcast %15 : vector<1x128xf32> to vector<8x128xf32>
    %17 = arith.addf %14, %16 : vector<8x128xf32>
    %cst_13 = arith.constant 0.000000e+00 : f32
    %18 = vector.broadcast %cst_13 : f32 to vector<8x128xf32>
    %19 = arith.subf %18, %17 : vector<8x128xf32>
    %20 = math.exp %19 : vector<8x128xf32>
    %cst_14 = arith.constant 1.000000e+00 : f32
    %21 = vector.broadcast %cst_14 : f32 to vector<8x128xf32>
    %22 = arith.addf %21, %20 : vector<8x128xf32>
    %cst_15 = arith.constant 1.000000e+00 : f32
    %23 = vector.broadcast %cst_15 : f32 to vector<8x128xf32>
    %24 = arith.divf %23, %22 : vector<8x128xf32>
    %c0_16 = arith.constant 0 : index
    %c0_17 = arith.constant 0 : index
    %25 = vector.load %arg6[%c0_16, %c0_17] : memref<8x128xf32, #tpu.memory_space<vmem>>, vector<8x128xf32>
    tpu.vector_store %arg6[%c0_16, %c0_17], %24 {strides = array<i32>} : memref<8x128xf32, #tpu.memory_space<vmem>>, vector<8x128xf32>,
    return
  }
  func.func @transform_0(%arg0: i32) -> (i32, i32) {
    %c0_i32 = arith.constant 0 : i32
    %c0_i32_0 = arith.constant 0 : i32
    return %arg0, %c0_i32 : i32, i32
  }
  func.func @transform_1(%arg0: i32) -> (i32, i32) {
    %c0_i32 = arith.constant 0 : i32
    %c0_i32_0 = arith.constant 0 : i32
    %c0_i32_1 = arith.constant 0 : i32
    return %c0_i32, %c0_i32_0 : i32, i32
  }
  func.func @transform_2(%arg0: i32) -> (i32, i32) {
    %c0_i32 = arith.constant 0 : i32
    %c0_i32_0 = arith.constant 0 : i32
    %c0_i32_1 = arith.constant 0 : i32
    return %c0_i32, %c0_i32_0 : i32, i32
  }
  func.func @transform_3(%arg0: i32) -> (i32, i32) {
    %c0_i32 = arith.constant 0 : i32
    %c0_i32_0 = arith.constant 0 : i32
    %c0_i32_1 = arith.constant 0 : i32
    return %c0_i32, %c0_i32_0 : i32, i32
  }
  func.func @transform_4(%arg0: i32) -> (i32, i32) {
    %c0_i32 = arith.constant 0 : i32
    %c0_i32_0 = arith.constant 0 : i32
    %c0_i32_1 = arith.constant 0 : i32
    return %c0_i32, %c0_i32_0 : i32, i32
  }
  func.func @transform_5(%arg0: i32) -> (i32, i32) {
    %c0_i32 = arith.constant 0 : i32
    %c0_i32_0 = arith.constant 0 : i32
    return %arg0, %c0_i32 : i32, i32
  }
}

</mosaic_0001>

<bundles_post_ra>
// kernel: tpu_custom_call.1
= control target key start
LH: loop header
LB: loop body
LE: loop exit
PB: predicated region body
PF: predicated region fallthrough
CT: control target
= control target key end

     0   :  { %10 = vsyncpa [#allocation3], 0  ;;  %s656_s0 = inlined_call_operand.hbm [shape: f32[8,128], index: 0, kind: input, shape index: {}]   ;;  %s657_s1 = inlined_call_operand.hbm [shape: f32[128,128], index: 1, kind: input, shape index: {}]   ;;  %s658_s2 = inlined_call_operand.vmem [shape: f32[1,128], index: 2, kind: input, shape index: {}]   ;;  %s659_s3 = inlined_call_operand.hbm [shape: f32[128,128], index: 3, kind: input, shape index: {}]   ;;  %s660_s4 = inlined_call_operand.vmem [shape: f32[1,128], index: 4, kind: input, shape index: {}]   ;;  %s661_s5 = inlined_call_operand.hbm [shape: f32[8,128], index: 5, kind: output, shape index: {}]  }
   0x1   :  { %11 = vsyncpa [#allocation6], 0 }
   0x2   :  { %12 = vsyncpa [#allocation4], 0  ;;  %s541_s18 = smov [#allocation5]   ;;  %s447_s22 = scalar_lea.hbm %s657_s1, 2048 }
   0x3   :  { %s28_s19 = sshll.u32 %s541_s18, 4  ;;  %p448_p0 = scmp.ne.s32.totalorder %s657_s1, %s447_s22  ;;  %s29_s19 = int_to_ptr.vmem [resolvable:$true] %s28_s19 }
   0x4   :  { %p451_p1 = scmp.lt.u32.totalorder %s447_s22, %s657_s1 }
   0x6   :  { %p453_p2 = pnand %p451_p1, %p448_p0 }
   0x8   :  { %456 = shalt.err (!%p453_p2)
}
   0x9   :  { %s457_s27 = scalar_lea.vmem %s29_s19, 2048  ;;  %p462_p4 = scmp.lt.s32.totalorder %s29_s19, %s29_s19 }
   0xa   :  { %p458_p3 = scmp.ne.s32.totalorder %s29_s19, %s457_s27  ;;  %p463_p5 = scmp.lt.s32.totalorder %s457_s27, %s457_s27 }
   0xc   :  { %p464_p6 = por %p463_p5, %p462_p4 }
   0xe   :  { %p465_p7 = pnand %p464_p6, %p458_p3 }
  0x10   :  { %468 = shalt.err (!%p465_p7)
}
  0x11   :  { %s542_s28 = smov 128   ;;  %s543_s29 = smov 8  }
  0x12   :  { %34 = dma.hbm_to_vmem [thread:$0]  %s657_s1, 2048, %s29_s19, [#allocation6], %s542_s28, %s542_s28, %s543_s29  }
  0x13   :  { %s544_s7 = smov [#allocation2]   ;;  %s545_s9 = smov [#allocation7]  }
  0x14   :  { %s19_s8 = sshll.u32 %s544_s7, 4  ;;  %s42_s10 = sshll.u32 %s545_s9, 4  ;;  %s20_s8 = int_to_ptr.vmem [resolvable:$true] %s19_s8  ;;  %s43_s10 = int_to_ptr.vmem [resolvable:$true] %s42_s10 }
  0x15   :  { %s469_s13 = scalar_lea.hbm %s656_s0, 128 }
  0x16   :  { %p470_p8 = scmp.ne.s32.totalorder %s656_s0, %s469_s13  ;;  %p473_p9 = scmp.lt.u32.totalorder %s469_s13, %s656_s0 }
  0x18   :  { %p475_p10 = pnand %p473_p9, %p470_p8 }
  0x1a   :  { %478 = shalt.err (!%p475_p10)
}
  0x1b   :  { %s479_s1 = scalar_lea.vmem %s20_s8, 128  ;;  %p484_p12 = scmp.lt.s32.totalorder %s20_s8, %s20_s8 }
  0x1c   :  { %p480_p11 = scmp.ne.s32.totalorder %s20_s8, %s479_s1  ;;  %p485_p13 = scmp.lt.s32.totalorder %s479_s1, %s479_s1 }
  0x1e   :  { %p486_p0 = por %p485_p13, %p484_p12 }
  0x20   :  { %p487_p1 = pnand %p486_p0, %p480_p11 }
  0x22   :  { %490 = shalt.err (!%p487_p1)
}
  0x23   :  { %22 = dma.hbm_to_vmem [thread:$0]  %s656_s0, 128, %s20_s8, [#allocation3]  }
  0x24   :  { %s491_s22 = scalar_lea.hbm %s659_s3, 2048 }
  0x25   :  { %p492_p2 = scmp.ne.s32.totalorder %s659_s3, %s491_s22  ;;  %p495_p3 = scmp.lt.u32.totalorder %s491_s22, %s659_s3 }
  0x27   :  { %p497_p4 = pnand %p495_p3, %p492_p2 }
  0x29   :  { %500 = shalt.err (!%p497_p4)
}
  0x2a   :  { %s501_s27 = scalar_lea.vmem %s43_s10, 2048  ;;  %p506_p6 = scmp.lt.s32.totalorder %s43_s10, %s43_s10 }
  0x2b   :  { %p502_p5 = scmp.ne.s32.totalorder %s43_s10, %s501_s27  ;;  %p507_p7 = scmp.lt.s32.totalorder %s501_s27, %s501_s27 }
  0x2d   :  { %p508_p8 = por %p507_p7, %p506_p6 }
  0x2f   :  { %p509_p9 = pnand %p508_p8, %p502_p5 }
  0x31   :  { %512 = shalt.err (!%p509_p9)
}
  0x32   :  { %48 = dma.hbm_to_vmem [thread:$0]  %s659_s3, 2048, %s43_s10, [#allocation6], %s542_s28, %s542_s28, %s543_s29  }
  0x33   :  { %535 = dma.done.wait [#allocation3], 128  }
  0x34   :  { %536 = vsyncadd [#allocation3], 4294967168 }
  0x35   :  { %537 = dma.done.wait [#allocation6], 4096  }
  0x36   :  { %538 = vsyncadd [#allocation6], 4294963200  ;;  %v546_v0 = vmov 0.0|0.0   ;;  %vm547_vm0 = vmmov 0   ;;  %v548_v1 = vmov 0.0   ;;  %v61_v2 = vld [vmem:[#allocation5] sm:$0xff] }
  0x37   :  { %382 = vmatprep.subr.bf16.mxu0 %v546_v0  ;;  %344 = vmatprep.mubr.msk.f32.mxu0 %vm547_vm0, %v548_v1  ;;  %v62_v3 = vld [vmem:[#allocation5 + $0x8] sm:$0xff]  ;;  %v63_v4 = vld [vmem:[#allocation5 + $0x10] sm:$0xff]  ;;  %v64_v6 = vld [vmem:[#allocation5 + $0x18] sm:$0xff] }
  0x38   :  { %406 = vmatprep.subr.bf16.mxu1 %v546_v0  ;;  %379 = vmatprep.mubr.msk.f32.mxu1 %vm547_vm0, %v548_v1  ;;  %v383_v5 = vpack.c.bf16 %v62_v3, %v61_v2  ;;  %v386_v7 = vpack.c.bf16 %v64_v6, %v63_v4  ;;  %v65_v8 = vld [vmem:[#allocation5 + $0x20] sm:$0xff]  ;;  %v66_v9 = vld [vmem:[#allocation5 + $0x28] sm:$0xff]  ;;  %v67_v11 = vld [vmem:[#allocation5 + $0x30] sm:$0xff] }
  0x39   :  { %v389_v10 = vpack.c.bf16 %v66_v9, %v65_v8  ;;  %v68_v12 = vld [vmem:[#allocation5 + $0x38] sm:$0xff]  ;;  %v69_v14 = vld [vmem:[#allocation5 + $0x40] sm:$0xff]  ;;  %v70_v15 = vld [vmem:[#allocation5 + $0x48] sm:$0xff] }
  0x3a   :  { %384 = vmatpush3.bf16.msra.mxu0 %v383_v5  ;;  %v392_v13 = vpack.c.bf16 %v68_v12, %v67_v11  ;;  %v395_v16 = vpack.c.bf16 %v70_v15, %v69_v14  ;;  %v71_v17 = vld [vmem:[#allocation5 + $0x50] sm:$0xff]  ;;  %v72_v18 = vld [vmem:[#allocation5 + $0x58] sm:$0xff]  ;;  %v73_v20 = vld [vmem:[#allocation5 + $0x60] sm:$0xff] }
  0x3b   :  { %385 = vmatprep.subr.bf16.mxu0 %v546_v0  ;;  %v398_v19 = vpack.c.bf16 %v72_v18, %v71_v17  ;;  %v74_v21 = vld [vmem:[#allocation5 + $0x68] sm:$0xff]  ;;  %v75_v23 = vld [vmem:[#allocation5 + $0x70] sm:$0xff]  ;;  %v76_v24 = vld [vmem:[#allocation5 + $0x78] sm:$0xff] }
  0x3c   :  { %v401_v22 = vpack.c.bf16 %v74_v21, %v73_v20  ;;  %v404_v25 = vpack.c.bf16 %v76_v24, %v75_v23  ;;  %v60_v26 = vld [vmem:[#allocation2] sm:$0xff]  ;;  %v160_v27 = vld [vmem:[#allocation7] sm:$0xff]  ;;  %v161_v28 = vld [vmem:[#allocation7 + $0x8] sm:$0xff] }
  0x3d   :  { %v407_v29 = vpack.c.bf16 %v161_v28, %v160_v27  ;;  %v162_v30 = vld [vmem:[#allocation7 + $0x10] sm:$0xff]  ;;  %v163_v31 = vld [vmem:[#allocation7 + $0x18] sm:$0xff]  ;;  %v164_v33 = vld [vmem:[#allocation7 + $0x20] sm:$0xff] }
  0x3e   :  { %387 = vmatpush3.bf16.msra.mxu0 %v386_v7  ;;  %v410_v32 = vpack.c.bf16 %v163_v31, %v162_v30  ;;  %v165_v34 = vld [vmem:[#allocation7 + $0x28] sm:$0xff]  ;;  %v166_v36 = vld [vmem:[#allocation7 + $0x30] sm:$0xff]  ;;  %v167_v37 = vld [vmem:[#allocation7 + $0x38] sm:$0xff] }
  0x3f   :  { %388 = vmatprep.subr.bf16.mxu0 %v546_v0  ;;  %408 = vmatpush3.bf16.msra.mxu1 %v407_v29  ;;  %v413_v35 = vpack.c.bf16 %v165_v34, %v164_v33  ;;  %v416_v38 = vpack.c.bf16 %v167_v37, %v166_v36  ;;  %v168_v39 = vld [vmem:[#allocation7 + $0x40] sm:$0xff]  ;;  %v169_v40 = vld [vmem:[#allocation7 + $0x48] sm:$0xff]  ;;  %v170_v42 = vld [vmem:[#allocation7 + $0x50] sm:$0xff] }
  0x40   :  { %409 = vmatprep.subr.bf16.mxu1 %v546_v0  ;;  %v419_v41 = vpack.c.bf16 %v169_v40, %v168_v39  ;;  %v171_v43 = vld [vmem:[#allocation7 + $0x58] sm:$0xff]  ;;  %v172_v45 = vld [vmem:[#allocation7 + $0x60] sm:$0xff]  ;;  %v173_v46 = vld [vmem:[#allocation7 + $0x68] sm:$0xff] }
  0x41   :  { %v422_v44 = vpack.c.bf16 %v171_v43, %v170_v42  ;;  %v425_v47 = vpack.c.bf16 %v173_v46, %v172_v45  ;;  %v174_v48 = vld [vmem:[#allocation7 + $0x70] sm:$0xff]  ;;  %v175_v49 = vld [vmem:[#allocation7 + $0x78] sm:$0xff] }
  0x42   :  { %390 = vmatpush3.bf16.msra.mxu0 %v389_v10  ;;  %v428_v50 = vpack.c.bf16 %v175_v49, %v174_v48  ;;  %v276_v51 = vld [vmem:[%s658_s2] ss:$0 sm:$0xff]  ;;  %s549_s2 = smov [#allocation8]  }
  0x43   :  { %391 = vmatprep.subr.bf16.mxu0 %v546_v0  ;;  %411 = vmatpush3.bf16.msra.mxu1 %v410_v32  ;;  %v277_v60 = vld [vmem:[%s660_s4] ss:$0 sm:$0xff]  ;;  %s266_s7 = sshll.u32 %s549_s2, 4  ;;  %s267_s7 = int_to_ptr.vmem [resolvable:$true] %s266_s7 }
  0x44   :  { %412 = vmatprep.subr.bf16.mxu1 %v546_v0  ;;  %s513_s8 = scalar_lea.vmem %s267_s7, 128  ;;  %p518_p11 = scmp.lt.s32.totalorder %s267_s7, %s267_s7 }
  0x45   :  { %p514_p10 = scmp.ne.s32.totalorder %s267_s7, %s513_s8  ;;  %p519_p12 = scmp.lt.s32.totalorder %s513_s8, %s513_s8 }
  0x46   :  { %393 = vmatpush3.bf16.msra.mxu0 %v392_v13 }
  0x47   :  { %394 = vmatprep.subr.bf16.mxu0 %v546_v0  ;;  %414 = vmatpush3.bf16.msra.mxu1 %v413_v35  ;;  %p520_p13 = por %p519_p12, %p518_p11 }
  0x48   :  { %415 = vmatprep.subr.bf16.mxu1 %v546_v0 }
  0x49   :  { %p521_p0 = pnand %p520_p13, %p514_p10 }
  0x4a   :  { %396 = vmatpush3.bf16.msra.mxu0 %v395_v16 }
  0x4b   :  { %397 = vmatprep.subr.bf16.mxu0 %v546_v0  ;;  %417 = vmatpush3.bf16.msra.mxu1 %v416_v38 }
  0x4c   :  { %418 = vmatprep.subr.bf16.mxu1 %v546_v0 }
  0x4e   :  { %399 = vmatpush3.bf16.msra.mxu0 %v398_v19 }
  0x4f   :  { %400 = vmatprep.subr.bf16.mxu0 %v546_v0  ;;  %420 = vmatpush3.bf16.msra.mxu1 %v419_v41 }
  0x50   :  { %421 = vmatprep.subr.bf16.mxu1 %v546_v0 }
  0x52   :  { %402 = vmatpush3.bf16.msra.mxu0 %v401_v22 }
  0x53   :  { %403 = vmatprep.subr.bf16.mxu0 %v546_v0  ;;  %423 = vmatpush3.bf16.msra.mxu1 %v422_v44 }
  0x54   :  { %424 = vmatprep.subr.bf16.mxu1 %v546_v0 }
  0x56   :  { %405 = vmatpush3.bf16.msra.mxu0 %v404_v25 }
  0x57   :  { %426 = vmatpush3.bf16.msra.mxu1 %v425_v47 }
  0x58   :  { %427 = vmatprep.subr.bf16.mxu1 %v546_v0 }
  0x59   :  { %345 = vmatmul.mubr.f32.vlgmr.msra.gmra.mrb[0].mxu0 %v60_v26 }
  0x5b   :  { %429 = vmatpush3.bf16.msra.mxu1 %v428_v50 }
 0x12c   :  { %v150_v52 = vpop.f32.mrb[0].mxu0 }
 0x12d   :  { %v151_v53 = vadd.f32 %v276_v51, %v150_v52  ;;  %v346_v54 = vpop.f32.mrb[1].mxu0 }
 0x12f   :  { %v154_v55 = vsub.f32 0.0, %v151_v53 }
 0x131   :  { %v155_v56 = vmul.f32 1.442695, %v154_v55 }
 0x133   :  { %439 = vpow2.f32 %v155_v56 }
 0x13d   :  { %v440_v57 = vpop.eup %439 }
 0x13e   :  { %v157_v58 = vadd.f32 1.0, %v440_v57 }
 0x140   :  { %441 = vrcp.f32 %v157_v58 }
 0x14a   :  { %v442_v59 = vpop.eup %441 }
 0x14b   :  { %380 = vmatmul.mubr.f32.vlgmr.msra.gmra.mrb[0].mxu1 %v442_v59 }
 0x21e   :  { %v249_v61 = vpop.f32.mrb[0].mxu1 }
 0x21f   :  { %v250_v62 = vadd.f32 %v277_v60, %v249_v61  ;;  %v381_v63 = vpop.f32.mrb[1].mxu1 }
 0x221   :  { %v253_v0 = vsub.f32 0.0, %v250_v62 }
 0x223   :  { %v254_v1 = vmul.f32 1.442695, %v253_v0 }
 0x225   :  { %443 = vpow2.f32 %v254_v1 }
 0x22f   :  { %v444_v2 = vpop.eup %443 }
 0x230   :  { %v256_v3 = vadd.f32 1.0, %v444_v2 }
 0x232   :  { %445 = vrcp.f32 %v256_v3 }
 0x23c   :  { %v446_v4 = vpop.eup %445 }
 0x23d   :  { %259 = vst [vmem:[#allocation8] sm:$0xff] %v446_v4 }
 0x23e   :  { %524 = shalt.err (!%p521_p0)
}
 0x23f   :  { %s525_s10 = scalar_lea.hbm %s661_s5, 128 }
 0x240   :  { %p526_p1 = scmp.ne.s32.totalorder %s661_s5, %s525_s10  ;;  %p529_p2 = scmp.lt.u32.totalorder %s525_s10, %s661_s5 }
 0x242   :  { %p531_p3 = pnand %p529_p2, %p526_p1 }
 0x244   :  { %534 = shalt.err (!%p531_p3)
}
 0x245   :  { %269 = dma.vmem_to_hbm [thread:$0]  %s267_s7, 128, %s661_s5, [#allocation4]  }
 0x246   :  { %539 = dma.done.wait [#allocation4], 128  }
 0x247   :  { %540 = vsyncadd [#allocation4], 4294967168 }
 0x248   :  { %273 = vsyncpa [#allocation3], 1 }
 0x249   :  { %274 = vsyncpa [#allocation6], 1 }
 0x24a   :  { %275 = vsyncpa [#allocation4], 1 }

</bundles_post_ra>
